<compile_context>
chip_gen: v5e
topology: v5e:2x2
jax: 0.10.0
libtpu: 0.0.40
codegen_flags: <defaults>
</compile_context>

<pallas_src>
import functools

import jax
import jax.numpy as jnp
from jax.experimental import pallas as pl
from jax.experimental.pallas import tpu as pltpu


def commnet_kernel(x_ref, w_in_ref, b_in_ref, w_comm_ref, b_comm_ref,
                   avg_ref, tile_ref, w_out_ref, b_out_ref, out_ref, *, n_layers):
    # x_ref: (tb, A*I)  -- tb problems per grid step, agent axis packed into lanes.
    # h    : (tb, A*H)
    h = jnp.dot(x_ref[...], w_in_ref[...], preferred_element_type=jnp.float32)
    h = jnp.maximum(h + b_in_ref[...], 0.0)

    # Communication layers (n_layers is static -> unrolled).
    # Linearity: mean_agents(h @ W + b) == mean_agents(h) @ W + b.
    for layer in range(n_layers):
        hm = jnp.dot(h, avg_ref[...], preferred_element_type=jnp.float32)         # (tb, H)
        mm = jnp.dot(hm, w_comm_ref[layer],
                     preferred_element_type=jnp.float32) + b_comm_ref[layer]      # (tb, H)
        h = jnp.maximum(
            h + jnp.dot(mm, tile_ref[...], preferred_element_type=jnp.float32), 0.0)

    out = jnp.dot(h, w_out_ref[...], preferred_element_type=jnp.float32)          # (tb, A*M)
    out_ref[...] = (out + b_out_ref[...]).astype(out_ref.dtype)


def _block_diag(w, n_blocks):
    """(I, H) -> (n_blocks*I, n_blocks*H) block-diagonal with n_blocks copies of w."""
    i, h = w.shape
    eye = jnp.eye(n_blocks, dtype=w.dtype)
    return (eye[:, None, :, None] * w[None, :, None, :]).reshape(n_blocks * i, n_blocks * h)


def _pick_batch_tile(B, target=512):
    """Largest divisor of B <= target whose block is sublane-legal
    (tb % 8 == 0 or tb == B).  If the grid would collapse to a single step,
    prefer a legal smaller tile so >= 2 grid steps remain (v7x megacore)."""
    divisors = [t for t in range(1, B + 1) if B % t == 0]
    legal = [t for t in divisors if t <= target and (t % 8 == 0 or t == B)]
    if legal:
        tb = max(legal)
    else:
        tb = B  # full-batch block is always layout-legal
    if B // tb < 2:
        half = [t for t in divisors if t <= max(tb // 2, 1) and t % 8 == 0]
        if half:
            tb = max(half)
    return tb


def commnet_forward(x, w_in, b_in, w_comm, b_comm, w_out, b_out,
                    *, n_layers, target_tile=512):
    """x: (n_agents, input_dim) single problem, or (B, n_agents, input_dim) batch.
    Fold timesteps into B at the call site to amortize launch overhead."""
    single = (x.ndim == 2)
    if single:
        x = x[None]
    B, A, I = x.shape
    H = w_in.shape[1]
    M = w_out.shape[1]

    tb = _pick_batch_tile(B, target_tile)

    # Lane-packed layout: one problem per row.
    x_flat = x.reshape(B, A * I)

    # Host-side constant operands (constant index_map -> VMEM resident across grid).
    w_in_bd = _block_diag(w_in, A)                                   # (A*I, A*H)
    b_in_t = jnp.tile(b_in, (1, A))                                  # (1, A*H)
    w_out_bd = _block_diag(w_out, A)                                 # (A*H, A*M)
    b_out_t = jnp.tile(b_out, (1, A))                                # (1, A*M)
    avg_mat = jnp.tile(jnp.eye(H, dtype=jnp.float32), (A, 1)) / A    # (A*H, H)  mean over agents
    tile_mat = jnp.tile(jnp.eye(H, dtype=jnp.float32), (1, A))       # (H, A*H)  broadcast to agents

    # VMEM footprint (f32): double-buffered streaming tiles + resident constants
    # + h-sized intermediates; set an explicit limit with headroom.
    est = 4 * (2 * tb * A * I + 2 * tb * A * M
               + 2 * ((A * I) * (A * H) + A * H
                      + n_layers * (H * H + H)
                      + (A * H) * H + H * (A * H)
                      + (A * H) * (A * M) + A * M)
               + 4 * tb * A * H)
    vmem_limit = int(min(48 << 20, max(32 << 20, 2 * est)))

    kernel = functools.partial(commnet_kernel, n_layers=n_layers)

    out_flat = pl.pallas_call(
        kernel,
        out_shape=jax.ShapeDtypeStruct((B, A * M), jnp.float32),
        grid_spec=pltpu.PrefetchScalarGridSpec(
            num_scalar_prefetch=0,
            grid=(B // tb,),
            in_specs=[
                # streamed, lane-dense activations
                pl.BlockSpec((tb, A * I), lambda b: (b, 0)),
                # constants: block index 0 -> stay VMEM-resident across grid steps
                pl.BlockSpec((A * I, A * H), lambda b: (0, 0)),
                pl.BlockSpec((1, A * H), lambda b: (0, 0)),
                pl.BlockSpec((n_layers, H, H), lambda b: (0, 0, 0)),
                pl.BlockSpec((n_layers, 1, H), lambda b: (0, 0, 0)),
                pl.BlockSpec((A * H, H), lambda b: (0, 0)),
                pl.BlockSpec((H, A * H), lambda b: (0, 0)),
                pl.BlockSpec((A * H, A * M), lambda b: (0, 0)),
                pl.BlockSpec((1, A * M), lambda b: (0, 0)),
            ],
            # lane-dense output slab: (tb, A*M) -> unmasked stores, wide writeback DMA
            out_specs=pl.BlockSpec((tb, A * M), lambda b: (b, 0)),
        ),
        compiler_params=pltpu.CompilerParams(
            dimension_semantics=("parallel",),
            vmem_limit_bytes=vmem_limit),
    )(x_flat, w_in_bd, b_in_t, w_comm, b_comm, avg_mat, tile_mat, w_out_bd, b_out_t)

    out = out_flat.reshape(B, A, M)
    return out[0] if single else out


def commnet_reference(x, w_in, b_in, w_comm, b_comm, w_out, b_out, *, n_layers):
    """Pure-JAX reference for a single (n_agents, input_dim) problem."""
    h = jax.nn.relu(x @ w_in + b_in)
    for layer in range(n_layers):
        m = h @ w_comm[layer] + b_comm[layer]
        h = jax.nn.relu(h + jnp.mean(m, axis=0, keepdims=True))
    return h @ w_out + b_out


if __name__ == "__main__":
    # Small shapes consistent with the module.
    n_agents, input_dim, hidden_dim, message_dim, n_layers = 8, 16, 32, 16, 2
    batch = 32  # independent CommNet problems (e.g. timesteps folded into one call)

    key = jax.random.PRNGKey(0)
    keys = jax.random.split(key, 7)

    xb = jax.random.normal(keys[0], (batch, n_agents, input_dim), dtype=jnp.float32)

    # Deterministic synthetic parameters (PyTorch-Linear shapes, stored transposed).
    w_in = jax.random.normal(keys[1], (input_dim, hidden_dim), jnp.float32) * 0.1
    b_in = jax.random.normal(keys[2], (1, hidden_dim), jnp.float32) * 0.1
    w_comm = jax.random.normal(keys[3], (n_layers, hidden_dim, hidden_dim), jnp.float32) * 0.1
    b_comm = jax.random.normal(keys[4], (n_layers, 1, hidden_dim), jnp.float32) * 0.1
    w_out = jax.random.normal(keys[5], (hidden_dim, message_dim), jnp.float32) * 0.1
    b_out = jax.random.normal(keys[6], (1, message_dim), jnp.float32) * 0.1

    # Batched call (one pallas_call, grid over batch tiles; >=2 steps for megacore).
    out_b = commnet_forward(xb, w_in, b_in, w_comm, b_comm, w_out, b_out,
                            n_layers=n_layers)
    out_b = jax.block_until_ready(out_b)
    assert out_b.shape == (batch, n_agents, message_dim)

    # Single-problem call (matches the original module's forward signature).
    out_s = commnet_forward(xb[0], w_in, b_in, w_comm, b_comm, w_out, b_out,
                            n_layers=n_layers)
    out_s = jax.block_until_ready(out_s)
    assert out_s.shape == (n_agents, message_dim)

    # Verify against pure-JAX reference (lane-packing is exact; the linearity
    # rewrite only reassociates f32 adds, so a modest tolerance suffices).
    for b in range(batch):
        ref_b = commnet_reference(xb[b], w_in, b_in, w_comm, b_comm, w_out, b_out,
                                  n_layers=n_layers)
        assert jnp.allclose(out_b[b], ref_b, atol=1e-4, rtol=1e-4), \
            f"mismatch vs JAX reference at batch {b}"
    ref_s = commnet_reference(xb[0], w_in, b_in, w_comm, b_comm, w_out, b_out,
                              n_layers=n_layers)
    assert jnp.allclose(out_s, ref_s, atol=1e-4, rtol=1e-4), "single-problem mismatch"

    print("KERNEL_OK")
</pallas_src>

<mosaic_0001>
module attributes {stable_mosaic.version = 11 : i64} {
  func.func @commnet_kernel(%arg0: i32, %arg1: memref<16x128xf32, #tpu.memory_space<vmem>>, %arg2: memref<128x256xf32, #tpu.memory_space<vmem>>, %arg3: memref<1x256xf32, #tpu.memory_space<vmem>>, %arg4: memref<2x32x32xf32, #tpu.memory_space<vmem>>, %arg5: memref<2x1x32xf32, #tpu.memory_space<vmem>>, %arg6: memref<256x32xf32, #tpu.memory_space<vmem>>, %arg7: memref<32x256xf32, #tpu.memory_space<vmem>>, %arg8: memref<256x128xf32, #tpu.memory_space<vmem>>, %arg9: memref<1x128xf32, #tpu.memory_space<vmem>>, %arg10: memref<16x128xf32, #tpu.memory_space<vmem>>) attributes {dimension_semantics = [#tpu.dimension_semantics<parallel>], iteration_bounds = array<i64: 2>, scalar_prefetch = 0 : i64, scratch_operands = 0 : i64, tpu.core_type = #tpu.core_type<tc>, window_params = [{transform_indices = @transform_0, window_bounds = array<i64: 16, 128>}, {pipeline_mode = #tpu.pipeline_mode<synchronous>, transform_indices = @transform_1, window_bounds = array<i64: 128, 256>}, {pipeline_mode = #tpu.pipeline_mode<synchronous>, transform_indices = @transform_2, window_bounds = array<i64: 1, 256>}, {pipeline_mode = #tpu.pipeline_mode<synchronous>, transform_indices = @transform_3, window_bounds = array<i64: 2, 32, 32>}, {pipeline_mode = #tpu.pipeline_mode<synchronous>, transform_indices = @transform_4, window_bounds = array<i64: 2, 1, 32>}, {pipeline_mode = #tpu.pipeline_mode<synchronous>, transform_indices = @transform_5, window_bounds = array<i64: 256, 32>}, {pipeline_mode = #tpu.pipeline_mode<synchronous>, transform_indices = @transform_6, window_bounds = array<i64: 32, 256>}, {pipeline_mode = #tpu.pipeline_mode<synchronous>, transform_indices = @transform_7, window_bounds = array<i64: 256, 128>}, {pipeline_mode = #tpu.pipeline_mode<synchronous>, transform_indices = @transform_8, window_bounds = array<i64: 1, 128>}, {transform_indices = @transform_9, window_bounds = array<i64: 16, 128>}]} {
    %c0 = arith.constant 0 : index
    %c0_0 = arith.constant 0 : index
    %0 = vector.load %arg1[%c0, %c0_0] : memref<16x128xf32, #tpu.memory_space<vmem>>, vector<16x128xf32>
    %c0_1 = arith.constant 0 : index
    %c0_2 = arith.constant 0 : index
    %1 = vector.load %arg2[%c0_1, %c0_2] : memref<128x256xf32, #tpu.memory_space<vmem>>, vector<128x256xf32>
    %cst = arith.constant dense<0.000000e+00> : vector<16x256xf32>
    %2 = tpu.matmul %0, %1, %cst {dimension_numbers = #tpu.dot_dimension_numbers<[1], [0], [0], [1], [0, 0, 1, 1], [], []>} : vector<16x128xf32>, vector<128x256xf32>, vector<16x256xf32> -> vector<16x256xf32>
    %c0_3 = arith.constant 0 : index
    %c0_4 = arith.constant 0 : index
    %3 = vector.load %arg3[%c0_3, %c0_4] : memref<1x256xf32, #tpu.memory_space<vmem>>, vector<1x256xf32>
    %4 = vector.broadcast %3 : vector<1x256xf32> to vector<16x256xf32>
    %5 = arith.addf %2, %4 : vector<16x256xf32>
    %cst_5 = arith.constant 0.000000e+00 : f32
    %6 = vector.broadcast %cst_5 : f32 to vector<16x256xf32>
    %7 = arith.maximumf %5, %6 : vector<16x256xf32>
    %c0_6 = arith.constant 0 : index
    %c0_7 = arith.constant 0 : index
    %8 = vector.load %arg6[%c0_6, %c0_7] : memref<256x32xf32, #tpu.memory_space<vmem>>, vector<256x32xf32>
    %cst_8 = arith.constant dense<0.000000e+00> : vector<16x32xf32>
    %9 = tpu.matmul %7, %8, %cst_8 {dimension_numbers = #tpu.dot_dimension_numbers<[1], [0], [0], [1], [0, 0, 1, 1], [], []>} : vector<16x256xf32>, vector<256x32xf32>, vector<16x32xf32> -> vector<16x32xf32>
    %c0_9 = arith.constant 0 : index
    %c0_10 = arith.constant 0 : index
    %c0_11 = arith.constant 0 : index
    %10 = vector.load %arg4[%c0_9, %c0_10, %c0_11] : memref<2x32x32xf32, #tpu.memory_space<vmem>>, vector<1x32x32xf32>
    %11 = vector.shape_cast %10 : vector<1x32x32xf32> to vector<32x32xf32>
    %cst_12 = arith.constant dense<0.000000e+00> : vector<16x32xf32>
    %12 = tpu.matmul %9, %11, %cst_12 {dimension_numbers = #tpu.dot_dimension_numbers<[1], [0], [0], [1], [0, 0, 1, 1], [], []>} : vector<16x32xf32>, vector<32x32xf32>, vector<16x32xf32> -> vector<16x32xf32>
    %c0_13 = arith.constant 0 : index
    %c0_14 = arith.constant 0 : index
    %c0_15 = arith.constant 0 : index
    %13 = vector.load %arg5[%c0_13, %c0_14, %c0_15] : memref<2x1x32xf32, #tpu.memory_space<vmem>>, vector<1x1x32xf32>
    %14 = vector.shape_cast %13 : vector<1x1x32xf32> to vector<1x32xf32>
    %15 = vector.broadcast %14 : vector<1x32xf32> to vector<16x32xf32>
    %16 = arith.addf %12, %15 : vector<16x32xf32>
    %c0_16 = arith.constant 0 : index
    %c0_17 = arith.constant 0 : index
    %17 = vector.load %arg7[%c0_16, %c0_17] : memref<32x256xf32, #tpu.memory_space<vmem>>, vector<32x256xf32>
    %cst_18 = arith.constant dense<0.000000e+00> : vector<16x256xf32>
    %18 = tpu.matmul %16, %17, %cst_18 {dimension_numbers = #tpu.dot_dimension_numbers<[1], [0], [0], [1], [0, 0, 1, 1], [], []>} : vector<16x32xf32>, vector<32x256xf32>, vector<16x256xf32> -> vector<16x256xf32>
    %19 = arith.addf %7, %18 : vector<16x256xf32>
    %cst_19 = arith.constant 0.000000e+00 : f32
    %20 = vector.broadcast %cst_19 : f32 to vector<16x256xf32>
    %21 = arith.maximumf %19, %20 : vector<16x256xf32>
    %c0_20 = arith.constant 0 : index
    %c0_21 = arith.constant 0 : index
    %22 = vector.load %arg6[%c0_20, %c0_21] : memref<256x32xf32, #tpu.memory_space<vmem>>, vector<256x32xf32>
    %cst_22 = arith.constant dense<0.000000e+00> : vector<16x32xf32>
    %23 = tpu.matmul %21, %22, %cst_22 {dimension_numbers = #tpu.dot_dimension_numbers<[1], [0], [0], [1], [0, 0, 1, 1], [], []>} : vector<16x256xf32>, vector<256x32xf32>, vector<16x32xf32> -> vector<16x32xf32>
    %c1 = arith.constant 1 : index
    %c0_23 = arith.constant 0 : index
    %c0_24 = arith.constant 0 : index
    %24 = vector.load %arg4[%c1, %c0_23, %c0_24] : memref<2x32x32xf32, #tpu.memory_space<vmem>>, vector<1x32x32xf32>
    %25 = vector.shape_cast %24 : vector<1x32x32xf32> to vector<32x32xf32>
    %cst_25 = arith.constant dense<0.000000e+00> : vector<16x32xf32>
    %26 = tpu.matmul %23, %25, %cst_25 {dimension_numbers = #tpu.dot_dimension_numbers<[1], [0], [0], [1], [0, 0, 1, 1], [], []>} : vector<16x32xf32>, vector<32x32xf32>, vector<16x32xf32> -> vector<16x32xf32>
    %c1_26 = arith.constant 1 : index
    %c0_27 = arith.constant 0 : index
    %c0_28 = arith.constant 0 : index
    %27 = vector.load %arg5[%c1_26, %c0_27, %c0_28] : memref<2x1x32xf32, #tpu.memory_space<vmem>>, vector<1x1x32xf32>
    %28 = vector.shape_cast %27 : vector<1x1x32xf32> to vector<1x32xf32>
    %29 = vector.broadcast %28 : vector<1x32xf32> to vector<16x32xf32>
    %30 = arith.addf %26, %29 : vector<16x32xf32>
    %c0_29 = arith.constant 0 : index
    %c0_30 = arith.constant 0 : index
    %31 = vector.load %arg7[%c0_29, %c0_30] : memref<32x256xf32, #tpu.memory_space<vmem>>, vector<32x256xf32>
    %cst_31 = arith.constant dense<0.000000e+00> : vector<16x256xf32>
    %32 = tpu.matmul %30, %31, %cst_31 {dimension_numbers = #tpu.dot_dimension_numbers<[1], [0], [0], [1], [0, 0, 1, 1], [], []>} : vector<16x32xf32>, vector<32x256xf32>, vector<16x256xf32> -> vector<16x256xf32>
    %33 = arith.addf %21, %32 : vector<16x256xf32>
    %cst_32 = arith.constant 0.000000e+00 : f32
    %34 = vector.broadcast %cst_32 : f32 to vector<16x256xf32>
    %35 = arith.maximumf %33, %34 : vector<16x256xf32>
    %c0_33 = arith.constant 0 : index
    %c0_34 = arith.constant 0 : index
    %36 = vector.load %arg8[%c0_33, %c0_34] : memref<256x128xf32, #tpu.memory_space<vmem>>, vector<256x128xf32>
    %cst_35 = arith.constant dense<0.000000e+00> : vector<16x128xf32>
    %37 = tpu.matmul %35, %36, %cst_35 {dimension_numbers = #tpu.dot_dimension_numbers<[1], [0], [0], [1], [0, 0, 1, 1], [], []>} : vector<16x256xf32>, vector<256x128xf32>, vector<16x128xf32> -> vector<16x128xf32>
    %c0_36 = arith.constant 0 : index
    %c0_37 = arith.constant 0 : index
    %38 = vector.load %arg9[%c0_36, %c0_37] : memref<1x128xf32, #tpu.memory_space<vmem>>, vector<1x128xf32>
    %39 = vector.broadcast %38 : vector<1x128xf32> to vector<16x128xf32>
    %40 = arith.addf %37, %39 : vector<16x128xf32>
    %c0_38 = arith.constant 0 : index
    %c0_39 = arith.constant 0 : index
    %41 = vector.load %arg10[%c0_38, %c0_39] : memref<16x128xf32, #tpu.memory_space<vmem>>, vector<16x128xf32>
    tpu.vector_store %arg10[%c0_38, %c0_39], %40 {strides = array<i32>} : memref<16x128xf32, #tpu.memory_space<vmem>>, vector<16x128xf32>,
    return
  }
  func.func @transform_0(%arg0: i32) -> (i32, i32) {
    %c0_i32 = arith.constant 0 : i32
    %c0_i32_0 = arith.constant 0 : i32
    return %arg0, %c0_i32 : i32, i32
  }
  func.func @transform_1(%arg0: i32) -> (i32, i32) {
    %c0_i32 = arith.constant 0 : i32
    %c0_i32_0 = arith.constant 0 : i32
    %c0_i32_1 = arith.constant 0 : i32
    return %c0_i32, %c0_i32_0 : i32, i32
  }
  func.func @transform_2(%arg0: i32) -> (i32, i32) {
    %c0_i32 = arith.constant 0 : i32
    %c0_i32_0 = arith.constant 0 : i32
    %c0_i32_1 = arith.constant 0 : i32
    return %c0_i32, %c0_i32_0 : i32, i32
  }
  func.func @transform_3(%arg0: i32) -> (i32, i32, i32) {
    %c0_i32 = arith.constant 0 : i32
    %c0_i32_0 = arith.constant 0 : i32
    %c0_i32_1 = arith.constant 0 : i32
    %c0_i32_2 = arith.constant 0 : i32
    return %c0_i32, %c0_i32_0, %c0_i32_1 : i32, i32, i32
  }
  func.func @transform_4(%arg0: i32) -> (i32, i32, i32) {
    %c0_i32 = arith.constant 0 : i32
    %c0_i32_0 = arith.constant 0 : i32
    %c0_i32_1 = arith.constant 0 : i32
    %c0_i32_2 = arith.constant 0 : i32
    return %c0_i32, %c0_i32_0, %c0_i32_1 : i32, i32, i32
  }
  func.func @transform_5(%arg0: i32) -> (i32, i32) {
    %c0_i32 = arith.constant 0 : i32
    %c0_i32_0 = arith.constant 0 : i32
    %c0_i32_1 = arith.constant 0 : i32
    return %c0_i32, %c0_i32_0 : i32, i32
  }
  func.func @transform_6(%arg0: i32) -> (i32, i32) {
    %c0_i32 = arith.constant 0 : i32
    %c0_i32_0 = arith.constant 0 : i32
    %c0_i32_1 = arith.constant 0 : i32
    return %c0_i32, %c0_i32_0 : i32, i32
  }
  func.func @transform_7(%arg0: i32) -> (i32, i32) {
    %c0_i32 = arith.constant 0 : i32
    %c0_i32_0 = arith.constant 0 : i32
    %c0_i32_1 = arith.constant 0 : i32
    return %c0_i32, %c0_i32_0 : i32, i32
  }
  func.func @transform_8(%arg0: i32) -> (i32, i32) {
    %c0_i32 = arith.constant 0 : i32
    %c0_i32_0 = arith.constant 0 : i32
    %c0_i32_1 = arith.constant 0 : i32
    return %c0_i32, %c0_i32_0 : i32, i32
  }
  func.func @transform_9(%arg0: i32) -> (i32, i32) {
    %c0_i32 = arith.constant 0 : i32
    %c0_i32_0 = arith.constant 0 : i32
    return %arg0, %c0_i32 : i32, i32
  }
}

</mosaic_0001>

<bundles_post_ra>
// kernel: tpu_custom_call.1
= control target key start
LH: loop header
LB: loop body
LE: loop exit
PB: predicated region body
PF: predicated region fallthrough
CT: control target
= control target key end

     0   :  { %s1965_s0 = inlined_call_operand.hbm [shape: f32[32,128], index: 0, kind: input, shape index: {}]   ;;  %s1966_s1 = inlined_call_operand.vmem [shape: f32[128,256], index: 1, kind: input, shape index: {}]   ;;  %s1967_s2 = inlined_call_operand.hbm [shape: f32[1,256], index: 2, kind: input, shape index: {}]   ;;  %s1968_s3 = inlined_call_operand.vmem [shape: f32[2,32,32], index: 3, kind: input, shape index: {}]   ;;  %s1969_s4 = inlined_call_operand.vmem [shape: f32[2,1,32], index: 4, kind: input, shape index: {}]   ;;  %s1970_s5 = inlined_call_operand.vmem [shape: f32[256,32], index: 5, kind: input, shape index: {}]   ;;  %s1971_s6 = inlined_call_operand.hbm [shape: f32[32,256], index: 6, kind: input, shape index: {}]   ;;  %s1972_s7 = inlined_call_operand.hbm [shape: f32[256,128], index: 7, kind: input, shape index: {}]   ;;  %s1973_s8 = inlined_call_operand.vmem [shape: f32[1,128], index: 8, kind: input, shape index: {}]   ;;  %s1974_s9 = inlined_call_operand.hbm [shape: f32[32,128], index: 9, kind: output, shape index: {}]  }
   0x1   :  { %1977 = sst [smem:[#allocation15_spill]] %s1967_s2 }
   0x2   :  { %1978 = sst [smem:[#allocation16_spill]] %s1971_s6 }
   0x3   :  { %1979 = sst [smem:[#allocation17_spill]] %s1972_s7 }
   0x4   :  { %14 = vsyncpa [#allocation3], 0 }
   0x5   :  { %16 = vsyncpa [#allocation3 + $0x1], 0 }
   0x6   :  { %17 = vsyncpa [#allocation6], 0 }
   0x7   :  { %18 = vsyncpa [#allocation9], 0 }
   0x8   :  { %19 = vsyncpa [#allocation4], 0 }
   0x9   :  { %21 = vsyncpa [#allocation4 + $0x1], 0  ;;  %s1404_s30 = smov 0   ;;  %s1406_s10 = smov 0  }
   0xa   :  { %s1408_s11 = smov 0   ;;  %s1410_s12 = smov 0  }
   0xb LB: > { %s1425_s13 = sadd.s32 4294967295, %s1343_s12   ;;  %s1024_s14 = sadd.s32 4294967294, %s1343_s12   ;;  %s1343_s12 = sphi %s1410_s12, %s1995_s12   ;;  %s1339_s11 = sphi %s1408_s11, %s1994_s11   ;;  %s1335_s10 = sphi %s1406_s10, %s1993_s10   ;;  %s1331_s30 = sphi %s1404_s30, %s1992_s30  }
   0xc   : > { %p47_p0 = scmp.ne.s32.totalorder %s1335_s10, %s1331_s30  ;;  %p48_p1 = scmp.eq.s32.totalorder %s1425_s13, 0 }
   0xd   : > { %p239_p2 = scmp.eq.s32.totalorder %s1425_s13, 1  ;;  %p245_p3 = scmp.eq.s32.totalorder %s1024_s14, 1 }
   0xe   : > { %p1434_p4 = por %p48_p1, %p47_p0  ;;  %p1025_p5 = scmp.ge.s32.totalorder %s1343_s12, 1 }
   0xf   : > { %p1439_p6 = por %p245_p3, %p47_p0  ;;  %p252_p7 = scmp.lt.s32.totalorder %s1343_s12, 3 }
  0x10   : > { %s1982_s2 = sld [smem:[#allocation15_spill]]  ;;  %s1345_s21 = smov [#allocation5]  }
  0x11   : > { %p1447_p8 = pnand %p1025_p5, %p252_p7  ;;  %s269_s22 = sshll.u32 %s1345_s21, 4  ;;  %s270_s22 = int_to_ptr.vmem [resolvable:$true] %s269_s22 }
  0x12   : > { %s1984_s6 = sld [smem:[#allocation16_spill]]  ;;  %s1346_s27 = smov [#allocation7]  }
  0x13   : > { %p1079_p10 = pneg %p1447_p8  ;;  %s289_s28 = sshll.u32 %s1346_s27, 4  ;;  %s290_s28 = int_to_ptr.vmem [resolvable:$true] %s289_s28 }
  0x14   : > { %s1347_s29 = smov 256   ;;  %s1348_s14 = smov 16  }
  0x15   : > { %p1459_p11 = pnand %p1079_p10, %p48_p1  ;;  %s1986_s7 = sld [smem:[#allocation17_spill]] }
  0x16   : > { %s267_s19 = sshll.u32 %s1982_s2, 4  ;;  %s1349_s23 = smov [#allocation8]   ;;  %s268_s19 = int_to_ptr.hbm [resolvable:$true] %s267_s19 }
  0x17   : > { %1082 = dma.hbm_to_vmem [thread:$0]  (!%p1459_p11), %s268_s19, 32, %s270_s22, [#allocation6]  }
  0x18   : > { %s287_s25 = sshll.u32 %s1984_s6, 4  ;;  %s303_s19 = sshll.u32 %s1349_s23, 4  ;;  %s288_s25 = int_to_ptr.hbm [resolvable:$true] %s287_s25  ;;  %s304_s19 = int_to_ptr.vmem [resolvable:$true] %s303_s19 }
  0x19   : > { %1085 = dma.hbm_to_vmem [thread:$0]  (!%p1459_p11), %s288_s25, 1024, %s290_s28, [#allocation6], %s1347_s29, %s1347_s29, %s1348_s14  }
  0x1a   : > { %s1975_s22 = smov 128   ;;  %s1976_s24 = smov 8  }
  0x1b   : > { %s301_s21 = sshll.u32 %s1986_s7, 4  ;;  %s1476_s25 = sadd.s32 1, %s1343_s12   ;;  %s302_s21 = int_to_ptr.hbm [resolvable:$true] %s301_s21 }
  0x1c   : > { %1088 = dma.hbm_to_vmem [thread:$0]  (!%p1459_p11), %s302_s21, 4096, %s304_s19, [#allocation9], %s1975_s22, %s1975_s22, %s1976_s24  }
  0x1d   : > { %s31_s27 = ssub.s32 %s1343_s12, %s1476_s25  ;;  %s34_s28 = sadd.s32 1, %s1339_s11 }
  0x1e   : > { %p32_p12 = scmp.eq.s32.totalorder %s31_s27, 0  ;;  %p41_p13 = scmp.ne.s32.totalorder %s1339_s11, %s1335_s10 }
  0x1f   : > { %p42_p0 = scmp.eq.s32.totalorder %s1343_s12, 0  ;;  %p1100_p5 = scmp.lt.s32.totalorder %s1343_s12, 2 }
  0x20   : > { %s1485_s29 = scalar_select %p32_p12, %s1339_s11, %s34_s28  }
  0x21   : > { %p1489_p3 = por %p239_p2, %p41_p13  ;;  %s320_s26 = sand.u32 1, %s1339_s11  }
  0x22   : > { %s1061_s17 = sshll.u32 %s1343_s12, 4  ;;  %p43_p7 = por %p42_p0, %p41_p13 }
  0x23   : > { %s1030_s18 = sshll.u32 %s320_s26, 4  ;;  %s329_s19 = scalar_lea.hbm %s1965_s0, %s1061_s17 }
  0x24   : > { %s330_s22 = sshll.u32 %s329_s19, 4  ;;  %s324_s27 = scalar_lea.vmem [#allocation2], %s1030_s18  ;;  %s331_s22 = int_to_ptr.hbm [resolvable:$true] %s330_s22 }
  0x25   : > { %s332_s24 = sshll.u32 %s324_s27, 4  ;;  %p1499_p10 = pnand %p1100_p5, %p43_p7  ;;  %s333_s24 = int_to_ptr.vmem [resolvable:$true] %s332_s24 }
  0x26   : > { %s321_s2 = scalar_lea.sflag [#allocation3], %s320_s26  ;;  %s1239_s6 = sshra.s32 %s331_s22, 4  ;;  %s1240_s6 = int_to_ptr.hbm [resolvable:$true] %s1239_s6 }
  0x27   : > { %s1241_s7 = scalar_lea.hbm %s1240_s6, 16  ;;  %p1243_p11 = pneg %p1499_p10 }
  0x28   : > { %p1242_p2 = scmp.ne.s32.totalorder %s1240_s6, %s1241_s7  ;;  %s1246_s18 = scalar_lea.hbm %s1965_s0, 32 }
  0x29   : > { %p1247_p0 = scmp.lt.s32.totalorder %s1240_s6, %s1965_s0  ;;  %p1248_p5 = scmp.lt.s32.totalorder %s1246_s18, %s1241_s7 }
  0x2a   : > { %p1244_p12 = pnand %p1243_p11, %p1242_p2 }
  0x2b   : > { %p1249_p7 = por %p1248_p5, %p1247_p0 }
  0x2c   : > { %p1245_p13 = pneg %p1244_p12 }
  0x2e   : > { %p1250_p9 = pnand %p1249_p7, %p1245_p13 }
  0x30   : > { %1253 = shalt.err (!%p1250_p9)
}
  0x31   : > { %s1989_s26 = smov 8   ;;  %s1990_s27 = smov 128  }
  0x32   : > { %1092 = dma.hbm_to_vmem [thread:$0]  (!%p1499_p10), %s331_s22, 256, %s333_s24, %s321_s2, %s1990_s27, %s1990_s27, %s1989_s26  }
  0x33   : > { %344 = sbr.rel (%p1447_p8) target bundleno = 1161 (0x489), region = 56  ;;  %s1519_s17 = sand.u32 (!%p1447_p8), 1, %s1335_s10  }
  0x34   : > { %s1034_s6 = sshll.u32 (!%p1447_p8), %s1519_s17, 4  ;;  %s347_s7 = scalar_lea.sflag (!%p1447_p8), [#allocation3], %s1519_s17 }
  0x35   : > { %s1525_s21 = scalar_lea.vmem (!%p1447_p8), [#allocation2], %s1034_s6 }
  0x38   : > { %1314 = dma.done.wait (%p1434_p4), %s347_s7, 256  }
  0x39   : > { %1316 = vsyncadd (%p1434_p4), %s347_s7, 4294967040 }
  0x3a   : > { %1318 = dma.done.wait (%p48_p1), [#allocation6], 1056  }
  0x3b   : > { %1320 = vsyncadd (%p48_p1), [#allocation6], 4294966240 }
  0x3c   : > { %1322 = dma.done.wait (%p48_p1), [#allocation9], 4096  }
  0x3d   : > { %1324 = vsyncadd (%p48_p1), [#allocation9], 4294963200  ;;  %v435_v0 = vld [vmem:[%s1966_s1 + $0xf0] sm:$0xff]  ;;  %v436_v1 = vld [vmem:[%s1966_s1 + $0xf8] sm:$0xff]  ;;  %vm579_vm0 = vcmask 261120   ;;  %s1062_s24 = sshll.u32 %s1425_s13, 4 }
  0x3e   : > { %v433_v2 = vld [vmem:[%s1966_s1 + $0xe0] sm:$0xff]  ;;  %443 = vmatpush.msra.mxu0 %v435_v0  ;;  %466 = vmatpush.msra.mxu1 %v436_v1  ;;  %v434_v3 = vld [vmem:[%s1966_s1 + $0xe8] sm:$0xff]  ;;  %v431_v4 = vld [vmem:[%s1966_s1 + $0xd0] sm:$0xff]  ;;  %s918_s18 = scalar_lea.hbm %s1974_s9, %s1062_s24  ;;  %s400_s23 = scalar_lea.vmem [#allocation10], %s1034_s6 }
  0x3f   : > { %v432_v5 = vld [vmem:[%s1966_s1 + $0xd8] sm:$0xff]  ;;  %v429_v6 = vld [vmem:[%s1966_s1 + $0xc0] sm:$0xff]  ;;  %v430_v7 = vld [vmem:[%s1966_s1 + $0xc8] sm:$0xff]  ;;  %s919_s19 = sshll.u32 %s400_s23, 4  ;;  %s921_s26 = sshll.u32 %s918_s18, 4  ;;  %s920_s19 = int_to_ptr.vmem [resolvable:$true] %s919_s19  ;;  %s922_s26 = int_to_ptr.hbm [resolvable:$true] %s921_s26 }
  0x40   : > { %444 = vmatpush.msra.mxu0 %v433_v2  ;;  %467 = vmatpush.msra.mxu1 %v434_v3  ;;  %v427_v8 = vld [vmem:[%s1966_s1 + $0xb0] sm:$0xff]  ;;  %v428_v9 = vld [vmem:[%s1966_s1 + $0xb8] sm:$0xff]  ;;  %v425_v10 = vld [vmem:[%s1966_s1 + $0xa0] sm:$0xff]  ;;  %s907_s27 = scalar_lea.sflag [#allocation4], %s1519_s17  ;;  %s1283_s13 = sshra.s32 %s922_s26, 4  ;;  %s1284_s13 = int_to_ptr.hbm [resolvable:$true] %s1283_s13 }
  0x41   : > { %v426_v11 = vld [vmem:[%s1966_s1 + $0xa8] sm:$0xff]  ;;  %v423_v12 = vld [vmem:[%s1966_s1 + $0x90] sm:$0xff]  ;;  %v424_v13 = vld [vmem:[%s1966_s1 + $0x98] sm:$0xff]  ;;  %s1285_s7 = scalar_lea.hbm %s1284_s13, 16  ;;  %s1289_s20 = scalar_lea.hbm %s1974_s9, 32 }
  0x42   : > { %445 = vmatpush.msra.mxu0 %v431_v4  ;;  %468 = vmatpush.msra.mxu1 %v432_v5  ;;  %v421_v14 = vld [vmem:[%s1966_s1 + $0x80] sm:$0xff]  ;;  %v1587_v15 = vld [vmem:[%s1970_s5 + $0x78] sm:$0xff]  ;;  %v422_v17 = vld [vmem:[%s1966_s1 + $0x88] sm:$0xff]  ;;  %p1286_p1 = scmp.ne.s32.totalorder %s1284_s13, %s1285_s7  ;;  %p1290_p9 = scmp.lt.s32.totalorder %s1284_s13, %s1974_s9 }
  0x43   : > { %v1592_v16 = vld [vmem:[%s1970_s5 + $0xf8] sm:$0xff]  ;;  %525 = vmatpush.msra.mxu2 %v1587_v15  ;;  %v1602_v18 = vld [vmem:[%s1970_s5 + $0x70] sm:$0xff]  ;;  %v1612_v20 = vld [vmem:[%s1970_s5 + $0x68] sm:$0xff]  ;;  %p1291_p10 = scmp.lt.s32.totalorder %s1289_s20, %s1285_s7 }
  0x44   : > { %446 = vmatpush.msra.mxu0 %v429_v6  ;;  %469 = vmatpush.msra.mxu1 %v430_v7  ;;  %v1607_v19 = vld [vmem:[%s1970_s5 + $0xf0] sm:$0xff]  ;;  %v1617_v21 = vld [vmem:[%s1970_s5 + $0xe8] sm:$0xff]  ;;  %v420_v23 = vld [vmem:[%s1966_s1 + $0x78] sm:$0xff]  ;;  %p1287_p4 = pnand %p1286_p1, %p1489_p3 }
  0x45   : > { %548 = vmatpush.msra.mxu3 %v1592_v16  ;;  %v419_v22 = vld [vmem:[%s1966_s1 + $0x70] sm:$0xff]  ;;  %526 = vmatpush.msra.mxu2 %v1602_v18  ;;  %v1630_v24 = vld [vmem:[%s1970_s5 + $0x60] sm:$0xff]  ;;  %v418_v27 = vld [vmem:[%s1966_s1 + $0x68] sm:$0xff]  ;;  %p1292_p2 = por %p1291_p10, %p1290_p9 }
  0x46   : > { %447 = vmatpush.msra.mxu0 %v427_v8  ;;  %470 = vmatpush.msra.mxu1 %v428_v9  ;;  %v1635_v25 = vld [vmem:[%s1970_s5 + $0xe0] sm:$0xff]  ;;  %v1648_v28 = vld [vmem:[%s1970_s5 + $0x58] sm:$0xff]  ;;  %v415_v30 = vld [vmem:[%s1966_s1 + $0x50] sm:$0xff]  ;;  %p1288_p8 = pneg %p1287_p4 }
  0x47   : > { %549 = vmatpush.msra.mxu3 %v1607_v19  ;;  %v417_v26 = vld [vmem:[%s1966_s1 + $0x60] sm:$0xff]  ;;  %527 = vmatpush.msra.mxu2 %v1612_v20  ;;  %v1653_v29 = vld [vmem:[%s1970_s5 + $0xd8] sm:$0xff]  ;;  %v1669_v33 = vld [vmem:[%s1970_s5 + $0x50] sm:$0xff] }
  0x48   : > { %448 = vmatpush.msra.mxu0 %v425_v10  ;;  %471 = vmatpush.msra.mxu1 %v426_v11  ;;  %v416_v31 = vld [vmem:[%s1966_s1 + $0x58] sm:$0xff]  ;;  %v413_v32 = vld [vmem:[%s1966_s1 + $0x40] sm:$0xff]  ;;  %v1674_v34 = vld [vmem:[%s1970_s5 + $0xd0] sm:$0xff]  ;;  %p1293_p11 = pnand %p1292_p2, %p1288_p8 }
  0x49   : > { %550 = vmatpush.msra.mxu3 %v1617_v21  ;;  %528 = vmatpush.msra.mxu2 %v1630_v24  ;;  %v414_v35 = vld [vmem:[%s1966_s1 + $0x48] sm:$0xff]  ;;  %v411_v38 = vld [vmem:[%s1966_s1 + $0x30] sm:$0xff]  ;;  %v412_v39 = vld [vmem:[%s1966_s1 + $0x38] sm:$0xff] }
  0x4a   : > { %449 = vmatpush.msra.mxu0 %v423_v12  ;;  %472 = vmatpush.msra.mxu1 %v424_v13  ;;  %v1684_v36 = vld [vmem:[%s1970_s5 + $0x48] sm:$0xff]  ;;  %v1702_v40 = vld [vmem:[%s1970_s5 + $0x40] sm:$0xff]  ;;  %v1720_v44 = vld [vmem:[%s1970_s5 + $0x38] sm:$0xff] }
  0x4b   : > { %551 = vmatpush.msra.mxu3 %v1635_v25  ;;  %529 = vmatpush.msra.mxu2 %v1648_v28  ;;  %v1689_v37 = vld [vmem:[%s1970_s5 + $0xc8] sm:$0xff]  ;;  %v1707_v41 = vld [vmem:[%s1970_s5 + $0xc0] sm:$0xff]  ;;  %v1725_v45 = vld [vmem:[%s1970_s5 + $0xb8] sm:$0xff] }
  0x4c   : > { %450 = vmatpush.msra.mxu0 %v421_v14  ;;  %473 = vmatpush.msra.mxu1 %v422_v17  ;;  %v409_v42 = vld [vmem:[%s1966_s1 + $0x20] sm:$0xff]  ;;  %v410_v43 = vld [vmem:[%s1966_s1 + $0x28] sm:$0xff]  ;;  %v407_v46 = vld [vmem:[%s1966_s1 + $0x10] sm:$0xff] }
  0x4d   : > { %552 = vmatpush.msra.mxu3 %v1653_v29  ;;  %530 = vmatpush.msra.mxu2 %v1669_v33  ;;  %v408_v47 = vld [vmem:[%s1966_s1 + $0x18] sm:$0xff]  ;;  %v499_v48 = vld [vmem:[%s1970_s5 + $0x30] sm:$0xff]  ;;  %v405_v50 = vld [vmem:[%s1966_s1] sm:$0xff] }
  0x4e   : > { %451 = vmatpush.msra.mxu0 %v419_v22  ;;  %474 = vmatpush.msra.mxu1 %v420_v23  ;;  %v1741_v49 = vld [vmem:[%s1970_s5 + $0xb0] sm:$0xff]  ;;  %v406_v51 = vld [vmem:[%s1966_s1 + $0x8] sm:$0xff]  ;;  %v497_v55 = vld [vmem:[%s1970_s5 + $0x20] sm:$0xff] }
  0x4f   : > { %553 = vmatpush.msra.mxu3 %v1674_v34  ;;  %531 = vmatpush.msra.mxu2 %v1684_v36  ;;  %v403_v52 = vld [vmem:[%s1525_s21] sm:$0xff]  ;;  %v498_v53 = vld [vmem:[%s1970_s5 + $0x28] sm:$0xff]  ;;  %v496_v57 = vld [vmem:[%s1970_s5 + $0x18] sm:$0xff] }
  0x50   : > { %452 = vmatpush.msra.mxu0 %v417_v26  ;;  %475 = vmatpush.msra.mxu1 %v418_v27  ;;  %v1759_v54 = vld [vmem:[%s1970_s5 + $0xa8] sm:$0xff]  ;;  %v1767_v56 = vld [vmem:[%s1970_s5 + $0xa0] sm:$0xff]  ;;  %v1776_v58 = vld [vmem:[%s1970_s5 + $0x98] sm:$0xff] }
  0x51   : > { %554 = vmatpush.msra.mxu3 %v1689_v37  ;;  %532 = vmatpush.msra.mxu2 %v1702_v40  ;;  %v404_v59 = vld [vmem:[%s1525_s21 + $0x8] sm:$0xff]  ;;  %v495_v60 = vld [vmem:[%s1970_s5 + $0x10] sm:$0xff]  ;;  %v493_v0 = vld [vmem:[%s1970_s5] sm:$0xff] }
  0x52   : > { %453 = vmatpush.msra.mxu0 %v415_v30  ;;  %476 = vmatpush.msra.mxu1 %v416_v31  ;;  %v1787_v61 = vld [vmem:[%s1970_s5 + $0x90] sm:$0xff]  ;;  %v494_v62 = vld [vmem:[%s1970_s5 + $0x8] sm:$0xff]  ;;  %v509_v1 = vld [vmem:[%s1970_s5 + $0x80] sm:$0xff] }
  0x53   : > { %555 = vmatpush.msra.mxu3 %v1707_v41  ;;  %533 = vmatpush.msra.mxu2 %v1720_v44  ;;  %v1796_v63 = vld [vmem:[%s1970_s5 + $0x88] sm:$0xff]  ;;  %v574_v2 = vld [vmem:[%s1968_s3 + $0x18] sm:$0xff]  ;;  %v573_v3 = vld [vmem:[%s1968_s3 + $0x10] sm:$0xff] }
  0x54   : > { %454 = vmatpush.msra.mxu0 %v413_v32  ;;  %477 = vmatpush.msra.mxu1 %v414_v35  ;;  %v572_v4 = vld [vmem:[%s1968_s3 + $0x8] sm:$0xff]  ;;  %v571_v5 = vld [vmem:[%s1968_s3] sm:$0xff] }
  0x55   : > { %556 = vmatpush.msra.mxu3 %v1725_v45  ;;  %534 = vmatpush.msra.mxu2 %v499_v48  ;;  %v437_v6 = vld [vmem:[#allocation5] sm:$0x3]  ;;  %v613_v23 = vld [vmem:[#allocation7 + $0x20] sm:$0xff] }
  0x56   : > { %455 = vmatpush.msra.mxu0 %v411_v38  ;;  %478 = vmatpush.msra.mxu1 %v412_v39  ;;  %v439_v7 = vperm.slane %v437_v6, 0  ;;  %v440_v8 = vperm.slane %v437_v6, 1  ;;  %v616_v22 = vld [vmem:[#allocation7 + $0x38] sm:$0xff]  ;;  %v609_v27 = vld [vmem:[#allocation7] sm:$0xff] }
  0x57   : > { %557 = vmatpush.msra.mxu3 %v1741_v49  ;;  %535 = vmatpush.msra.mxu2 %v498_v53  ;;  %v612_v26 = vld [vmem:[#allocation7 + $0x18] sm:$0xff] }
  0x58   : > { %456 = vmatpush.msra.mxu0 %v409_v42  ;;  %479 = vmatpush.msra.mxu1 %v410_v43  ;;  %v1146_v35 = vld [vmem:[%s1969_s4] ss:$0 sm:$0xff]  ;;  %v1046_v42 = vld [vmem:[%s1968_s3 + $0x28] sm:$0xff] }
  0x59   : > { %558 = vmatpush.msra.mxu3 %v1759_v54  ;;  %536 = vmatpush.msra.mxu2 %v497_v55  ;;  %v1045_v43 = vld [vmem:[%s1968_s3 + $0x20] sm:$0xff] }
  0x5a   : > { %457 = vmatpush.msra.mxu0 %v407_v46  ;;  %480 = vmatpush.msra.mxu1 %v408_v47  ;;  %v849_v6 = vld [vmem:[#allocation8 + $0xd8] sm:$0xff] }
  0x5b   : > { %559 = vmatpush.msra.mxu3 %v1767_v56  ;;  %537 = vmatpush.msra.mxu2 %v496_v57 }
  0x5c   : > { %458 = vmatpush.msra.mxu0 %v405_v50  ;;  %481 = vmatpush.msra.mxu1 %v406_v51 }
  0x5d   : > { %459 = vmatmul.f32.vlgmr.msra.gmra.mxu0 %v403_v52  ;;  %482 = vmatmul.f32.vlgmr.msra.gmra.mxu1 %v403_v52 }
  0x5e   : > { %560 = vmatpush.msra.mxu3 %v1776_v58  ;;  %538 = vmatpush.msra.mxu2 %v495_v60 }
  0x5f   : > { %598 = vmatpush.msrb.mxu0 %v574_v2  ;;  %v851_v2 = vld [vmem:[#allocation8 + $0xe8] sm:$0xff] }
  0x60   : > { %561 = vmatpush.msra.mxu3 %v1787_v61  ;;  %539 = vmatpush.msra.mxu2 %v494_v62 }
  0x61   : > { %599 = vmatpush.msrb.mxu0 %v573_v3  ;;  %v835_v3 = vld [vmem:[#allocation8 + $0x68] sm:$0xff] }
  0x62   : > { %562 = vmatpush.msra.mxu3 %v1796_v63  ;;  %540 = vmatpush.msra.mxu2 %v493_v0 }
  0x63   : > { %600 = vmatpush.msrb.mxu0 %v572_v4  ;;  %v850_v4 = vld [vmem:[#allocation8 + $0xe0] sm:$0xff] }
  0x64   : > { %563 = vmatpush.msra.mxu3 %v509_v1  ;;  %658 = vmatpush.msrb.mxu2 %v616_v22 }
  0x65   : > { %462 = vmatmul.f32.gmra.mxu0 %v404_v59  ;;  %485 = vmatmul.f32.gmra.mxu1 %v404_v59 }
  0x66   : > { %677 = vmatpush.msrb.mxu3 %v1587_v15  ;;  %601 = vmatpush.msrb.mxu0 %v571_v5  ;;  %v834_v5 = vld [vmem:[#allocation8 + $0x60] sm:$0xff] }
  0x68   : > { %678 = vmatpush.msrb.mxu3 %v1602_v18  ;;  %700 = vmatpush.msra.mxu0 %v1592_v16 }
  0x6a   : > { %679 = vmatpush.msrb.mxu3 %v1612_v20  ;;  %701 = vmatpush.msra.mxu0 %v1607_v19 }
  0x6c   : > { %680 = vmatpush.msrb.mxu3 %v1630_v24  ;;  %702 = vmatpush.msra.mxu0 %v1617_v21  ;;  %v615_v21 = vld [vmem:[#allocation7 + $0x30] sm:$0xff]  ;;  %v614_v24 = vld [vmem:[#allocation7 + $0x28] sm:$0xff] }
  0x6d   : > { %635 = vmatpush.msrb.mxu1 %v615_v21  ;;  %659 = vmatpush.msrb.mxu2 %v614_v24 }
  0x6e   : > { %681 = vmatpush.msrb.mxu3 %v1648_v28  ;;  %703 = vmatpush.msra.mxu0 %v1635_v25  ;;  %v611_v25 = vld [vmem:[#allocation7 + $0x10] sm:$0xff]  ;;  %v610_v28 = vld [vmem:[#allocation7 + $0x8] sm:$0xff] }
  0x6f   : > { %636 = vmatpush.msrb.mxu1 %v613_v23  ;;  %660 = vmatpush.msrb.mxu2 %v612_v26 }
  0x70   : > { %682 = vmatpush.msrb.mxu3 %v1669_v33  ;;  %704 = vmatpush.msra.mxu0 %v1653_v29 }
  0x71   : > { %637 = vmatpush.msrb.mxu1 %v611_v25  ;;  %661 = vmatpush.msrb.mxu2 %v610_v28 }
  0x72   : > { %683 = vmatpush.msrb.mxu3 %v1684_v36  ;;  %705 = vmatpush.msra.mxu0 %v1674_v34 }
  0x73   : > { %638 = vmatpush.msrb.mxu1 %v609_v27 }
  0x74   : > { %684 = vmatpush.msrb.mxu3 %v1702_v40  ;;  %706 = vmatpush.msra.mxu0 %v1689_v37  ;;  %v1048_v40 = vld [vmem:[%s1968_s3 + $0x38] sm:$0xff] }
  0x75   : > { %751 = vmatpush.msra.mxu1 %v1048_v40 }
  0x76   : > { %685 = vmatpush.msrb.mxu3 %v1720_v44  ;;  %707 = vmatpush.msra.mxu0 %v1707_v41  ;;  %v1047_v41 = vld [vmem:[%s1968_s3 + $0x30] sm:$0xff] }
  0x77   : > { %752 = vmatpush.msra.mxu1 %v1047_v41 }
  0x78   : > { %686 = vmatpush.msrb.mxu3 %v499_v48  ;;  %708 = vmatpush.msra.mxu0 %v1725_v45 }
  0x79   : > { %753 = vmatpush.msra.mxu1 %v1046_v42 }
  0x7a   : > { %687 = vmatpush.msrb.mxu3 %v498_v53  ;;  %709 = vmatpush.msra.mxu0 %v1741_v49 }
  0x7b   : > { %754 = vmatpush.msra.mxu1 %v1045_v43 }
  0x7c   : > { %688 = vmatpush.msrb.mxu3 %v497_v55  ;;  %710 = vmatpush.msra.mxu0 %v1759_v54 }
  0x7e   : > { %689 = vmatpush.msrb.mxu3 %v496_v57  ;;  %711 = vmatpush.msra.mxu0 %v1767_v56 }
  0x80   : > { %690 = vmatpush.msrb.mxu3 %v495_v60  ;;  %712 = vmatpush.msra.mxu0 %v1776_v58 }
  0x82   : > { %691 = vmatpush.msrb.mxu3 %v494_v62  ;;  %713 = vmatpush.msra.mxu0 %v1787_v61  ;;  %v853_v62 = vld [vmem:[#allocation8 + $0xf8] sm:$0xff] }
  0x84   : > { %692 = vmatpush.msrb.mxu3 %v493_v0  ;;  %714 = vmatpush.msra.mxu0 %v1796_v63  ;;  %v852_v63 = vld [vmem:[#allocation8 + $0xf0] sm:$0xff]  ;;  %v837_v0 = vld [vmem:[#allocation8 + $0x78] sm:$0xff] }
  0x86   : > { %715 = vmatpush.msra.mxu0 %v509_v1  ;;  %v836_v1 = vld [vmem:[#allocation8 + $0x70] sm:$0xff] }
  0xda   : > { %v460_v9 = vpop.f32.mrf.mxu0  ;;  %v483_v10 = vpop.f32.mrf.mxu1 }
  0xdb   : > { %v1832_v11 = vadd.f32 %v460_v9, %v439_v7  ;;  %v1834_v12 = vadd.f32 %v483_v10, %v440_v8  ;;  %v832_v9 = vld [vmem:[#allocation8 + $0x50] sm:$0xff]  ;;  %v847_v10 = vld [vmem:[#allocation8 + $0xc8] sm:$0xff] }
  0xdd   : > { %v489_v13 = vmax.f32 %v1832_v11, 0.0  ;;  %v490_v14 = vmax.f32 %v1834_v12, 0.0  ;;  %v831_v11 = vld [vmem:[#allocation8 + $0x48] sm:$0xff]  ;;  %v846_v12 = vld [vmem:[#allocation8 + $0xc0] sm:$0xff] }
  0xdf   : > { %541 = vmatmul.f32.vlgmr.msra.gmra.mxu2 %v489_v13  ;;  %564 = vmatmul.f32.vlgmr.msra.gmra.mxu3 %v490_v14 }
  0xe0   : > { %780 = vmatpush.msra.mxu2 %v615_v21  ;;  %881 = vmatpush.msra.mxu3 %v853_v62 }
  0xe2   : > { %v463_v15 = vpop.f32.mrf.mxu0  ;;  %v486_v16 = vpop.f32.mrf.mxu1  ;;  %781 = vmatpush.msra.mxu2 %v613_v23  ;;  %882 = vmatpush.msra.mxu3 %v852_v63  ;;  %v841_v23 = vld [vmem:[#allocation8 + $0x98] sm:$0xff] }
  0xe3   : > { %v1846_v17 = vadd.f32 %v463_v15, %v439_v7  ;;  %v1848_v18 = vadd.f32 %v486_v16, %v440_v8  ;;  %v833_v7 = vld [vmem:[#allocation8 + $0x58] sm:$0xff]  ;;  %v848_v8 = vld [vmem:[#allocation8 + $0xd0] sm:$0xff] }
  0xe4   : > { %782 = vmatpush.msra.mxu2 %v611_v25  ;;  %883 = vmatpush.msra.mxu3 %v851_v2  ;;  %v829_v15 = vld [vmem:[#allocation8 + $0x38] sm:$0xff]  ;;  %v844_v16 = vld [vmem:[#allocation8 + $0xb0] sm:$0xff] }
  0xe5   : > { %v491_v19 = vmax.f32 %v1846_v17, 0.0  ;;  %v492_v20 = vmax.f32 %v1848_v18, 0.0  ;;  %v828_v17 = vld [vmem:[#allocation8 + $0x30] sm:$0xff]  ;;  %v1147_v18 = vld [vmem:[%s1969_s4 + $0x1] ss:$0 sm:$0xff] }
  0xe6   : > { %783 = vmatpush.msra.mxu2 %v609_v27  ;;  %884 = vmatpush.msra.mxu3 %v850_v4  ;;  %v840_v27 = vld [vmem:[#allocation8 + $0x90] sm:$0xff] }
  0xe7   : > { %544 = vmatmul.f32.gmra.mxu2 %v491_v19  ;;  %567 = vmatmul.f32.gmra.mxu3 %v492_v20 }
  0xe8   : > { %885 = vmatpush.msra.mxu3 %v849_v6 }
  0xea   : > { %886 = vmatpush.msra.mxu3 %v848_v8 }
  0xec   : > { %887 = vmatpush.msra.mxu3 %v847_v10 }
  0xee   : > { %888 = vmatpush.msra.mxu3 %v846_v12 }
 0x162   : > { %v542_v29 = vpop.f32.mrf.mxu2  ;;  %v565_v30 = vpop.f32.mrf.mxu3 }
 0x163   : > { %v566_v31 = vadd.f32 %v565_v30, %v542_v29  ;;  %v839_v29 = vld [vmem:[#allocation8 + $0x88] sm:$0xff]  ;;  %v825_v30 = vld [vmem:[#allocation8 + $0x18] sm:$0xff] }
 0x165   : > { %1039 = vmatmul.msk.f32.vlgmr.msrb.gmra.mxu0 %vm579_vm0, %v566_v31  ;;  %v838_v31 = vld [vmem:[#allocation8 + $0x80] sm:$0xff] }
 0x16a   : > { %v545_v32 = vpop.f32.mrf.mxu2  ;;  %v568_v33 = vpop.f32.mrf.mxu3 }
 0x16b   : > { %v569_v34 = vadd.f32 %v568_v33, %v545_v32  ;;  %v824_v32 = vld [vmem:[#allocation8 + $0x10] sm:$0xff]  ;;  %v823_v33 = vld [vmem:[#allocation8 + $0x8] sm:$0xff] }
 0x16d   : > { %1040 = vmatmul.msk.f32.gmra.mxu0 %vm579_vm0, %v569_v34  ;;  %v822_v34 = vld [vmem:[#allocation8] sm:$0xff] }
 0x1e2   : > { %v603_v36 = vpop.f32.mrf.mxu0 }
 0x1e3   : > { %v604_v37 = vadd.f32 %v1146_v35, %v603_v36 }
 0x1e5   : > { %1041 = vmatmul.msk.f32.vlgmr.msrb.gmra.mxu1 %vm579_vm0, %v604_v37  ;;  %1043 = vmatmul.msk.f32.vlgmr.msrb.gmra.mxu2 %vm579_vm0, %v604_v37 }
 0x1e6   : > { %803 = vmatpush.msrb.mxu1 %v616_v22  ;;  %858 = vmatpush.msrb.mxu2 %v837_v0 }
 0x1e8   : > { %804 = vmatpush.msrb.mxu1 %v614_v24  ;;  %859 = vmatpush.msrb.mxu2 %v836_v1 }
 0x1ea   : > { %v606_v38 = vpop.f32.mrf.mxu0  ;;  %805 = vmatpush.msrb.mxu1 %v612_v26  ;;  %860 = vmatpush.msrb.mxu2 %v835_v3  ;;  %v827_v26 = vld [vmem:[#allocation8 + $0x28] sm:$0xff] }
 0x1eb   : > { %v607_v39 = vadd.f32 %v1146_v35, %v606_v38 }
 0x1ec   : > { %806 = vmatpush.msrb.mxu1 %v610_v28  ;;  %861 = vmatpush.msrb.mxu2 %v834_v5  ;;  %v826_v28 = vld [vmem:[#allocation8 + $0x20] sm:$0xff] }
 0x1ed   : > { %1042 = vmatmul.msk.f32.gmra.mxu1 %vm579_vm0, %v607_v39  ;;  %1044 = vmatmul.msk.f32.gmra.mxu2 %vm579_vm0, %v607_v39 }
 0x1ee   : > { %862 = vmatpush.msrb.mxu2 %v833_v7 }
 0x1f0   : > { %863 = vmatpush.msrb.mxu2 %v832_v9 }
 0x1f2   : > { %864 = vmatpush.msrb.mxu2 %v831_v11 }
 0x262   : > { %v640_v44 = vpop.f32.mrf.mxu1 }
 0x263   : > { %v1884_v45 = vadd.f32 %v640_v44, %v489_v13  ;;  %v830_v13 = vld [vmem:[#allocation8 + $0x40] sm:$0xff] }
 0x264   : > { %865 = vmatpush.msrb.mxu2 %v830_v13 }
 0x265   : > { %v673_v46 = vmax.f32 %v1884_v45, 0.0  ;;  %v1148_v45 = vld [vmem:[%s1973_s8] ss:$0 sm:$0xff] }
 0x266   : > { %866 = vmatpush.msrb.mxu2 %v829_v15 }
 0x267   : > { %693 = vmatmul.f32.vlgmr.msrb.gmra.mxu3 %v673_v46 }
 0x268   : > { %v663_v47 = vpop.f32.mrf.mxu2  ;;  %867 = vmatpush.msrb.mxu2 %v828_v17 }
 0x269   : > { %v1891_v48 = vadd.f32 %v663_v47, %v490_v14  ;;  %v845_v14 = vld [vmem:[#allocation8 + $0xb8] sm:$0xff] }
 0x26a   : > { %v643_v49 = vpop.f32.mrf.mxu1  ;;  %889 = vmatpush.msra.mxu3 %v845_v14  ;;  %868 = vmatpush.msrb.mxu2 %v827_v26 }
 0x26b   : > { %v674_v50 = vmax.f32 %v1891_v48, 0.0  ;;  %v1896_v51 = vadd.f32 %v643_v49, %v491_v19  ;;  %v843_v19 = vld [vmem:[#allocation8 + $0xa8] sm:$0xff] }
 0x26c   : > { %890 = vmatpush.msra.mxu3 %v844_v16  ;;  %869 = vmatpush.msrb.mxu2 %v826_v28 }
 0x26d   : > { %v675_v52 = vmax.f32 %v1896_v51, 0.0  ;;  %716 = vmatmul.f32.vlgmr.msra.gmra.mxu0 %v674_v50 }
 0x26e   : > { %891 = vmatpush.msra.mxu3 %v843_v19  ;;  %870 = vmatpush.msrb.mxu2 %v825_v30 }
 0x26f   : > { %696 = vmatmul.f32.gmra.mxu3 %v675_v52 }
 0x270   : > { %v666_v53 = vpop.f32.mrf.mxu2  ;;  %871 = vmatpush.msrb.mxu2 %v824_v32 }
 0x271   : > { %v1905_v54 = vadd.f32 %v666_v53, %v492_v20  ;;  %v842_v20 = vld [vmem:[#allocation8 + $0xa0] sm:$0xff] }
 0x272   : > { %892 = vmatpush.msra.mxu3 %v842_v20  ;;  %872 = vmatpush.msrb.mxu2 %v823_v33 }
 0x273   : > { %v676_v55 = vmax.f32 %v1905_v54, 0.0 }
 0x274   : > { %893 = vmatpush.msra.mxu3 %v841_v23  ;;  %873 = vmatpush.msrb.mxu2 %v822_v34 }
 0x275   : > { %719 = vmatmul.f32.gmra.mxu0 %v676_v55 }
 0x276   : > { %894 = vmatpush.msra.mxu3 %v840_v27 }
 0x278   : > { %895 = vmatpush.msra.mxu3 %v839_v29 }
 0x27a   : > { %896 = vmatpush.msra.mxu3 %v838_v31 }
 0x2ea   : > { %v694_v56 = vpop.f32.mrf.mxu3  ;;  %v717_v57 = vpop.f32.mrf.mxu0 }
 0x2eb   : > { %v718_v58 = vadd.f32 %v717_v57, %v694_v56 }
 0x2ed   : > { %1050 = vmatmul.msk.f32.vlgmr.msra.gmra.mxu1 %vm579_vm0, %v718_v58 }
 0x2f2   : > { %v697_v59 = vpop.f32.mrf.mxu3  ;;  %v720_v60 = vpop.f32.mrf.mxu0 }
 0x2f3   : > { %v721_v61 = vadd.f32 %v720_v60, %v697_v59 }
 0x2f5   : > { %1051 = vmatmul.msk.f32.gmra.mxu1 %vm579_vm0, %v721_v61 }
 0x36a   : > { %v756_v21 = vpop.f32.mrf.mxu1 }
 0x36b   : > { %v757_v22 = vadd.f32 %v1147_v18, %v756_v21 }
 0x36d   : > { %1052 = vmatmul.msk.f32.vlgmr.msra.gmra.mxu2 %vm579_vm0, %v757_v22  ;;  %1054 = vmatmul.msk.f32.vlgmr.msrb.gmra.mxu1 %vm579_vm0, %v757_v22 }
 0x372   : > { %v759_v24 = vpop.f32.mrf.mxu1 }
 0x373   : > { %v760_v25 = vadd.f32 %v1147_v18, %v759_v24 }
 0x375   : > { %1053 = vmatmul.msk.f32.gmra.mxu2 %vm579_vm0, %v760_v25  ;;  %1055 = vmatmul.msk.f32.gmra.mxu1 %vm579_vm0, %v760_v25 }
 0x3ea   : > { %v808_v35 = vpop.f32.mrf.mxu1 }
 0x3eb   : > { %v815_v36 = vadd.f32 %v808_v35, %v674_v50 }
 0x3ed   : > { %v819_v37 = vmax.f32 %v815_v36, 0.0 }
 0x3ef   : > { %897 = vmatmul.f32.vlgmr.msra.gmra.mxu3 %v819_v37 }
 0x3f0   : > { %v785_v38 = vpop.f32.mrf.mxu2 }
 0x3f1   : > { %v814_v39 = vadd.f32 %v785_v38, %v673_v46 }
 0x3f2   : > { %v811_v40 = vpop.f32.mrf.mxu1 }
 0x3f3   : > { %v818_v41 = vmax.f32 %v814_v39, 0.0  ;;  %v817_v42 = vadd.f32 %v811_v40, %v676_v55 }
 0x3f5   : > { %v821_v43 = vmax.f32 %v817_v42, 0.0  ;;  %874 = vmatmul.f32.vlgmr.msrb.gmra.mxu2 %v818_v41 }
 0x3f7   : > { %900 = vmatmul.f32.gmra.mxu3 %v821_v43 }
 0x3f8   : > { %v788_v44 = vpop.f32.mrf.mxu2 }
 0x3f9   : > { %v816_v47 = vadd.f32 %v788_v44, %v675_v52 }
 0x3fb   : > { %v820_v48 = vmax.f32 %v816_v47, 0.0 }
 0x3fd   : > { %877 = vmatmul.f32.gmra.mxu2 %v820_v48 }
 0x472   : > { %v898_v46 = vpop.f32.mrf.mxu3 }
 0x478   : > { %v875_v49 = vpop.f32.mrf.mxu2 }
 0x479   : > { %v876_v50 = vadd.f32 %v1148_v45, %v875_v49 }
 0x47a   : > { %v901_v54 = vpop.f32.mrf.mxu3 }
 0x47b   : > { %v899_v53 = vadd.f32 %v898_v46, %v876_v50 }
 0x47d   : > { %904 = vst [vmem:[%s400_s23] sm:$0xff] %v899_v53 }
 0x480   : > { %v878_v51 = vpop.f32.mrf.mxu2 }
 0x481   : > { %v879_v52 = vadd.f32 %v1148_v45, %v878_v51 }
 0x483   : > { %v902_v55 = vadd.f32 %v901_v54, %v879_v52 }
 0x485   : > { %905 = vst [vmem:[%s400_s23 + $0x8] sm:$0xff] %v902_v55 }
 0x486   : > { %1296 = shalt.err (!%p1293_p11)
}
 0x487   : > { %s1352_s17 = smov 128   ;;  %s1353_s24 = smov 8  }
 0x488   : > { %1077 = dma.vmem_to_hbm [thread:$0]  (%p1489_p3), %s920_s19, 256, %s922_s26, %s907_s27, %s1352_s17, %s1352_s17, %s1353_s24  }
 0x489 PF: > { %s936_s15 = sand.u32 1, %s1331_s30   ;;  %p1991_p12 = scmp.ge.s32.totalorder %s1343_s12, 2 }
 0x48a   : > { %s937_s28 = scalar_lea.sflag [#allocation4], %s936_s15 }
 0x48b   : > { %p1094_p13 = pnand %p1991_p12, %p1439_p6 }
 0x48d   : > { %p1095_p0 = pneg %p1094_p13 }
 0x48f   : > { %1326 = dma.done.wait (%p1095_p0), %s937_s28, 256  }
 0x490   : > { %1328 = vsyncadd (%p1095_p0), %s937_s28, 4294967040  ;;  %p24_p5 = scmp.ge.s32.totalorder %s1476_s25, 4   ;;  %s1992_s30 = smov %s1335_s10 }
 0x491   : > { %s1993_s10 = smov %s1339_s11  ;;  %s1994_s11 = smov %s1485_s29 }
 0x492   : > { %s1995_s12 = smov %s1476_s25  ;;  %26 = sbr.rel (!%p24_p5) target bundleno = 11 (0xb), region = 115 }
 0x497   :  { %943 = vsyncpa [#allocation3], 1 }
 0x498   :  { %945 = vsyncpa [#allocation3 + $0x1], 1 }
 0x499   :  { %946 = vsyncpa [#allocation6], 1 }
 0x49a   :  { %947 = vsyncpa [#allocation9], 1 }
 0x49b   :  { %948 = vsyncpa [#allocation4], 1 }
 0x49c   :  { %950 = vsyncpa [#allocation4 + $0x1], 1 }

</bundles_post_ra>
